<compile_context>
chip_gen: v7x
topology: tpu7x:2x2x1
jax: 0.10.0
libtpu: 0.0.40
codegen_flags: <defaults>
</compile_context>

<pallas_src>
import math
from functools import partial

import jax
import jax.numpy as jnp
from jax.experimental import pallas as pl
from jax.experimental.pallas import tpu as pltpu

ADTYPE = jnp.bfloat16          # activation storage dtype between kernels
WDTYPE = jnp.bfloat16          # matmul weight storage dtype
PDTYPE = jnp.float32           # norm scales / biases
VMEM_LIMIT = 48 * 1024 * 1024  # < v7x 64 MiB physical; raise toward 96 MiB on v5e/v6e


# ------------------------------- linear ------------------------------------

def _linear_kernel(x_ref, w_ref, b_ref, o_ref):
    x = x_ref[...].astype(jnp.bfloat16)
    acc = jnp.dot(x, w_ref[...], preferred_element_type=jnp.float32)
    o_ref[...] = (acc + b_ref[...]).astype(o_ref.dtype)


def linear(x, w, b, *, tm=256, tn=512, resident_bytes=8 * 1024 * 1024):
    """x:(M,K) @ w:(K,N) + b -> (M,N) bf16.

    Small weights: single N block with constant (0,0) index -> DMA'd once, resident
    across all M tiles. Large weights (vocab projection): tiled over N (tn multiple
    of 128 keeps stores lane-dense; pad vocab to 256 upstream for best results).
    """
    M, K = x.shape
    N = w.shape[1]
    tm = M if M <= tm else tm
    bias = b.reshape(1, N)
    if w.size * w.dtype.itemsize <= resident_bytes:
        grid = (pl.cdiv(M, tm),)
        in_specs = [pl.BlockSpec((tm, K), lambda i: (i, 0)),
                    pl.BlockSpec((K, N), lambda i: (0, 0)),
                    pl.BlockSpec((1, N), lambda i: (0, 0))]
        out_specs = pl.BlockSpec((tm, N), lambda i: (i, 0))
        dims = ("parallel",)
    else:
        tn = N if N <= tn else tn
        grid = (pl.cdiv(M, tm), pl.cdiv(N, tn))
        in_specs = [pl.BlockSpec((tm, K), lambda i, j: (i, 0)),
                    pl.BlockSpec((K, tn), lambda i, j: (0, j)),
                    pl.BlockSpec((1, tn), lambda i, j: (0, j))]
        out_specs = pl.BlockSpec((tm, tn), lambda i, j: (i, j))
        dims = ("parallel", "parallel")
    return pl.pallas_call(
        _linear_kernel,
        out_shape=jax.ShapeDtypeStruct((M, N), ADTYPE),
        grid=grid, in_specs=in_specs, out_specs=out_specs,
        compiler_params=pltpu.CompilerParams(
            dimension_semantics=dims, vmem_limit_bytes=VMEM_LIMIT),
    )(x, w, bias)


# --------------------- fused q/kv projection (self-attn) -------------------

def _qkv_proj_kernel(x_ref, wq_ref, bq_ref, wkv_ref, bkv_ref, q_ref, kv_ref):
    x = x_ref[...].astype(jnp.bfloat16)
    q = jnp.dot(x, wq_ref[...], preferred_element_type=jnp.float32) + bq_ref[...]
    q_ref[...] = q.astype(q_ref.dtype)
    kv = jnp.dot(x, wkv_ref[...], preferred_element_type=jnp.float32) + bkv_ref[...]
    kv_ref[...] = kv.astype(kv_ref.dtype)


def qkv_proj(x, wq, bq, wkv, bkv, *, tm=256):
    """Fused q and kv projections: reads x from HBM once, two outputs."""
    M, K = x.shape
    Nq, Nkv = wq.shape[1], wkv.shape[1]
    tm = M if M <= tm else tm
    return pl.pallas_call(
        _qkv_proj_kernel,
        out_shape=(jax.ShapeDtypeStruct((M, Nq), ADTYPE),
                   jax.ShapeDtypeStruct((M, Nkv), ADTYPE)),
        grid=(pl.cdiv(M, tm),),
        in_specs=[pl.BlockSpec((tm, K), lambda i: (i, 0)),
                  pl.BlockSpec((K, Nq), lambda i: (0, 0)),
                  pl.BlockSpec((1, Nq), lambda i: (0, 0)),
                  pl.BlockSpec((K, Nkv), lambda i: (0, 0)),
                  pl.BlockSpec((1, Nkv), lambda i: (0, 0))],
        out_specs=(pl.BlockSpec((tm, Nq), lambda i: (i, 0)),
                   pl.BlockSpec((tm, Nkv), lambda i: (i, 0))),
        compiler_params=pltpu.CompilerParams(
            dimension_semantics=("parallel",), vmem_limit_bytes=VMEM_LIMIT),
    )(x, wq, bq.reshape(1, Nq), wkv, bkv.reshape(1, Nkv))


# --------------------------------- FFN --------------------------------------

def _ffn_kernel(x_ref, w1_ref, b1_ref, w2_ref, b2_ref, o_ref, acc_ref):
    f = pl.program_id(1)

    @pl.when(f == 0)
    def _():
        acc_ref[...] = jnp.zeros_like(acc_ref)

    x = x_ref[...].astype(jnp.bfloat16)
    h = jnp.dot(x, w1_ref[...], preferred_element_type=jnp.float32) + b1_ref[...]
    h = jnp.maximum(h, 0.0).astype(jnp.bfloat16)
    acc_ref[...] += jnp.dot(h, w2_ref[...], preferred_element_type=jnp.float32)

    @pl.when(f == pl.num_programs(1) - 1)
    def _():
        o_ref[...] = (acc_ref[...] + b2_ref[...]).astype(o_ref.dtype)


def ffn(x, w1, b1, w2, b2, *, tm=256, tf=512):
    """relu(x@w1+b1)@w2+b2 with F as a grid reduction axis (f32 VMEM accumulator)."""
    M, D = x.shape
    F = w1.shape[1]
    tm = M if M <= tm else tm
    tf = F if (F <= tf or F % tf != 0) else tf
    grid = (pl.cdiv(M, tm), F // tf)
    return pl.pallas_call(
        _ffn_kernel,
        out_shape=jax.ShapeDtypeStruct((M, D), ADTYPE),
        grid=grid,
        in_specs=[pl.BlockSpec((tm, D), lambda i, f: (i, 0)),
                  pl.BlockSpec((D, tf), lambda i, f: (0, f)),
                  pl.BlockSpec((1, tf), lambda i, f: (0, f)),
                  pl.BlockSpec((tf, D), lambda i, f: (f, 0)),
                  pl.BlockSpec((1, D), lambda i, f: (0, 0))],
        out_specs=pl.BlockSpec((tm, D), lambda i, f: (i, 0)),
        scratch_shapes=[pltpu.VMEM((tm, D), jnp.float32)],
        compiler_params=pltpu.CompilerParams(
            dimension_semantics=("parallel", "arbitrary"),
            vmem_limit_bytes=VMEM_LIMIT),
    )(x, w1, b1.reshape(1, F), w2, b2.reshape(1, D))


# ---------------------------- Add + LayerNorm -------------------------------

def _add_layernorm_kernel(x_ref, r_ref, g_ref, b_ref, o_ref):
    x = x_ref[...].astype(jnp.float32) + r_ref[...].astype(jnp.float32)
    mean = jnp.mean(x, axis=-1, keepdims=True)
    var = jnp.mean((x - mean) ** 2, axis=-1, keepdims=True)
    y = (x - mean) * jax.lax.rsqrt(var + 1e-5)
    o_ref[...] = (y * g_ref[...] + b_ref[...]).astype(o_ref.dtype)


def add_layer_norm(x, r, g, b, *, tm=1024):
    M, D = x.shape
    tm = M if M <= tm else tm
    return pl.pallas_call(
        _add_layernorm_kernel,
        out_shape=jax.ShapeDtypeStruct((M, D), ADTYPE),
        grid=(pl.cdiv(M, tm),),
        in_specs=[pl.BlockSpec((tm, D), lambda i: (i, 0)),
                  pl.BlockSpec((tm, D), lambda i: (i, 0)),
                  pl.BlockSpec((1, D), lambda i: (0, 0)),
                  pl.BlockSpec((1, D), lambda i: (0, 0))],
        out_specs=pl.BlockSpec((tm, D), lambda i: (i, 0)),
        compiler_params=pltpu.CompilerParams(dimension_semantics=("parallel",)),
    )(x, r, g.reshape(1, D), b.reshape(1, D))


# --------------------- flash-style differential attention -------------------

def _diff_attn_kernel(q_ref, kv_ref, pb_ref, o_ref, m_ref, l_ref, acc_ref, *,
                      H, dh, scale, lam, lam_init, causal):
    # Grid = (batch, q-tiles, kv-tiles); heads unrolled statically inside so the
    # layout stays lane-dense. Two online-softmax states (m, l, acc) per head —
    # one per differential branch — live in VMEM scratch across the kv sweep.
    tq = q_ref.shape[1]
    tk = kv_ref.shape[1]
    D = H * dh
    qi = pl.program_id(1)
    ki = pl.program_id(2)

    @pl.when(ki == 0)
    def _():
        m_ref[...] = jnp.full_like(m_ref, -jnp.inf)
        l_ref[...] = jnp.zeros_like(l_ref)
        acc_ref[...] = jnp.zeros_like(acc_ref)

    contract_nt = (((1,), (1,)), ((), ()))   # (tq,dh) x (tk,dh) -> (tq,tk)
    contract_nn = (((1,), (0,)), ((), ()))   # (tq,tk) x (tk,dh) -> (tq,dh)

    def process_tile():
        bias = pb_ref[0].astype(jnp.float32)                       # (1, tk)
        if causal:
            row = qi * tq + jax.lax.broadcasted_iota(jnp.int32, (tq, tk), 0)
            col = ki * tk + jax.lax.broadcasted_iota(jnp.int32, (tq, tk), 1)
            bias = bias + jnp.where(row >= col, 0.0, -1e9)
        for h in range(H):                                          # static unroll
            lo = h * dh
            vh = kv_ref[0, :, 2 * D + lo: 2 * D + lo + dh]          # (tk, dh) bf16
            for br in range(2):                                     # two softmax branches
                # fold scale into the small (tq, dh) q slice, not the (tq, tk) scores
                qh = q_ref[0, :, br * D + lo: br * D + lo + dh] * scale
                kh = kv_ref[0, :, br * D + lo: br * D + lo + dh]
                s = jax.lax.dot_general(qh, kh, contract_nt,
                                        preferred_element_type=jnp.float32) + bias
                m_old = m_ref[br, h]                                # (tq, 1)
                m_new = jnp.maximum(m_old, jnp.max(s, axis=-1, keepdims=True))
                a = jnp.exp(m_old - m_new)
                p = jnp.exp(s - m_new)
                l_ref[br, h] = a * l_ref[br, h] + jnp.sum(p, axis=-1, keepdims=True)
                pv = jax.lax.dot_general(p.astype(jnp.bfloat16), vh, contract_nn,
                                         preferred_element_type=jnp.float32)
                acc_ref[br, :, lo:lo + dh] = a * acc_ref[br, :, lo:lo + dh] + pv
                m_ref[br, h] = m_new

    if causal:
        # skip kv tiles entirely above the diagonal (causal decoder self-attention)
        @pl.when(ki * tk <= qi * tq + (tq - 1))
        def _():
            process_tile()
    else:
        process_tile()

    @pl.when(ki == pl.num_programs(2) - 1)
    def _():
        for h in range(H):
            lo = h * dh
            r1 = pl.reciprocal(l_ref[0, h], approx=True)            # (tq, 1)
            r2 = pl.reciprocal(l_ref[1, h], approx=True) * lam      # fold lambda here
            o = acc_ref[0, :, lo:lo + dh] * r1 - acc_ref[1, :, lo:lo + dh] * r2
            # per-head RMSNorm + (1 - lambda_init) scaling (canonical DIFF attention)
            o = o * jax.lax.rsqrt(jnp.mean(o * o, axis=-1, keepdims=True) + 1e-5)
            o_ref[0, :, lo:lo + dh] = (o * (1.0 - lam_init)).astype(o_ref.dtype)


def diff_attention(q, kv, pad_bias, *, num_heads, causal, scale, lam, lam_init,
                   tq_max=256, tk_max=512):
    # q: (B, Sq, 2D) bf16, kv: (B, Sk, 3D) bf16, pad_bias: (B, 1, Sk) f32 -> (B, Sq, D)
    B, Sq, D2 = q.shape
    Sk = kv.shape[1]
    D = D2 // 2
    H = num_heads
    dh = D // H
    tq = Sq if Sq <= tq_max else tq_max
    tk = Sk if Sk <= tk_max else tk_max
    nq = pl.cdiv(Sq, tq)
    nk = pl.cdiv(Sk, tk)

    kern = partial(_diff_attn_kernel, H=H, dh=dh, scale=scale, lam=lam,
                   lam_init=lam_init, causal=causal)
    return pl.pallas_call(
        kern,
        out_shape=jax.ShapeDtypeStruct((B, Sq, D), ADTYPE),
        grid=(B, nq, nk),
        in_specs=[pl.BlockSpec((1, tq, 2 * D), lambda b, qi, ki: (b, qi, 0)),
                  pl.BlockSpec((1, tk, 3 * D), lambda b, qi, ki: (b, ki, 0)),
                  pl.BlockSpec((1, 1, tk), lambda b, qi, ki: (b, 0, ki))],
        out_specs=pl.BlockSpec((1, tq, D), lambda b, qi, ki: (b, qi, 0)),
        scratch_shapes=[pltpu.VMEM((2, H, tq, 1), jnp.float32),   # m per branch/head
                        pltpu.VMEM((2, H, tq, 1), jnp.float32),   # l per branch/head
                        pltpu.VMEM((2, tq, D), jnp.float32)],     # acc per branch
        compiler_params=pltpu.CompilerParams(
            dimension_semantics=("parallel", "parallel", "arbitrary"),
            vmem_limit_bytes=VMEM_LIMIT),
    )(q, kv, pad_bias)


# ------------------------------ model (glue) --------------------------------

def _pad_bias(padding_mask, B, Sk):
    # (B, Sk) {0,1} mask -> (B, 1, Sk) additive bias (0 / -1e9)
    if padding_mask is None:
        return jnp.zeros((B, 1, Sk), jnp.float32)
    return jnp.where(padding_mask[:, None, :] > 0, 0.0, -1e9).astype(jnp.float32)


def diff_mha(p, x_q, x_kv, *, num_heads, layer_idx, causal, kv_pad_bias):
    B, Sq, D = x_q.shape
    Sk = x_kv.shape[1]
    dh = D // num_heads

    if x_q is x_kv:
        # self-attention: fused q/kv projection, x read from HBM once
        q, kv = qkv_proj(x_q.reshape(B * Sq, D), p["wq"], p["bq"], p["wkv"], p["bkv"])
    else:
        q = linear(x_q.reshape(B * Sq, D), p["wq"], p["bq"])
        kv = linear(x_kv.reshape(B * Sk, D), p["wkv"], p["bkv"])
    q = q.reshape(B, Sq, 2 * D)
    kv = kv.reshape(B, Sk, 3 * D)

    lam_init = 0.8 - 0.6 * math.exp(-0.3 * layer_idx)

    o = diff_attention(q, kv, kv_pad_bias, num_heads=num_heads, causal=causal,
                       scale=1.0 / math.sqrt(dh), lam=lam_init, lam_init=lam_init)
    o = linear(o.reshape(B * Sq, D), p["wo"], p["bo"])
    return o.reshape(B, Sq, D)


def encoder_layer(p, x, *, num_heads, layer_idx, pad_bias):
    B, S, D = x.shape
    a = diff_mha(p["attn"], x, x, num_heads=num_heads, layer_idx=layer_idx,
                 causal=False, kv_pad_bias=pad_bias)
    x = add_layer_norm(x.reshape(B * S, D), a.reshape(B * S, D),
                       p["ln1_g"], p["ln1_b"]).reshape(B, S, D)
    f = ffn(x.reshape(B * S, D), p["w1"], p["b1"], p["w2"], p["b2"])
    x = add_layer_norm(x.reshape(B * S, D), f, p["ln2_g"], p["ln2_b"]).reshape(B, S, D)
    return x


def decoder_layer(p, y, enc_out, *, num_heads, layer_idx,
                  self_pad_bias, enc_pad_bias):
    B, S, D = y.shape
    a = diff_mha(p["self_attn"], y, y, num_heads=num_heads, layer_idx=layer_idx,
                 causal=True, kv_pad_bias=self_pad_bias)
    y = add_layer_norm(y.reshape(B * S, D), a.reshape(B * S, D),
                       p["ln1_g"], p["ln1_b"]).reshape(B, S, D)
    c = diff_mha(p["cross_attn"], y, enc_out, num_heads=num_heads,
                 layer_idx=layer_idx, causal=False, kv_pad_bias=enc_pad_bias)
    y = add_layer_norm(y.reshape(B * S, D), c.reshape(B * S, D),
                       p["ln2_g"], p["ln2_b"]).reshape(B, S, D)
    f = ffn(y.reshape(B * S, D), p["w1"], p["b1"], p["w2"], p["b2"])
    y = add_layer_norm(y.reshape(B * S, D), f, p["ln3_g"], p["ln3_b"]).reshape(B, S, D)
    return y


def differential_transformer_forward(params, encoder_input, decoder_input,
                                     encoder_padding_mask=None,
                                     decoder_padding_mask=None, *, num_heads):
    assert encoder_input.ndim == 2
    B, Se = encoder_input.shape
    Sd = decoder_input.shape[1]
    enc_pad = _pad_bias(encoder_padding_mask, B, Se)
    dec_pad = _pad_bias(decoder_padding_mask, B, Sd)

    # -------- encoder --------
    x = (params["enc"]["tok_emb"][encoder_input]
         + params["enc"]["pos_emb"][:Se][None]).astype(ADTYPE)
    E = x.shape[-1]
    x = linear(x.reshape(B * Se, E),
               params["enc"]["in_proj_w"], params["enc"]["in_proj_b"]).reshape(B, Se, -1)
    for li, lp in enumerate(params["enc"]["layers"]):
        x = encoder_layer(lp, x, num_heads=num_heads, layer_idx=li, pad_bias=enc_pad)
    enc_out = x

    # -------- decoder --------
    y = (params["dec"]["tok_emb"][decoder_input]
         + params["dec"]["pos_emb"][:Sd][None]).astype(ADTYPE)
    y = linear(y.reshape(B * Sd, y.shape[-1]),
               params["dec"]["in_proj_w"], params["dec"]["in_proj_b"]).reshape(B, Sd, -1)
    for li, lp in enumerate(params["dec"]["layers"]):
        y = decoder_layer(lp, y, enc_out, num_heads=num_heads, layer_idx=li,
                          self_pad_bias=dec_pad, enc_pad_bias=enc_pad)

    logits = linear(y.reshape(B * Sd, -1), params["dec"]["out_w"], params["dec"]["out_b"])
    return logits.reshape(B, Sd, -1)


# ----------------------------- parameter init --------------------------------

def xavier_normal(key, shape):
    # matches torch.nn.init.xavier_normal_ std = sqrt(2 / (fan_in + fan_out))
    std = math.sqrt(2.0 / (shape[0] + shape[1]))
    return (std * jax.random.normal(key, shape)).astype(PDTYPE)


def _w(a):
    return a.astype(WDTYPE)   # matmul weights stored bf16 (f32 accumulation in-kernel)


def init_params(key, cfg):
    D, E, F = cfg["d_model"], cfg["embed_dim"], cfg["ffwd_dim"]
    keys = iter(jax.random.split(key, 512))
    nk = lambda: next(keys)

    def attn_params():
        wk = xavier_normal(nk(), (D, 2 * D))
        wv = xavier_normal(nk(), (D, D))
        return dict(
            wq=_w(xavier_normal(nk(), (D, 2 * D))), bq=jnp.zeros((2 * D,), PDTYPE),
            wkv=_w(jnp.concatenate([wk, wv], axis=1)), bkv=jnp.zeros((3 * D,), PDTYPE),
            wo=_w(xavier_normal(nk(), (D, D))), bo=jnp.zeros((D,), PDTYPE),
        )

    def enc_layer_params():
        return dict(
            attn=attn_params(),
            ln1_g=jnp.ones((D,), PDTYPE), ln1_b=jnp.zeros((D,), PDTYPE),
            w1=_w(xavier_normal(nk(), (D, F))), b1=jnp.zeros((F,), PDTYPE),
            w2=_w(xavier_normal(nk(), (F, D))), b2=jnp.zeros((D,), PDTYPE),
            ln2_g=jnp.ones((D,), PDTYPE), ln2_b=jnp.zeros((D,), PDTYPE),
        )

    def dec_layer_params():
        return dict(
            self_attn=attn_params(),
            cross_attn=attn_params(),
            ln1_g=jnp.ones((D,), PDTYPE), ln1_b=jnp.zeros((D,), PDTYPE),
            ln2_g=jnp.ones((D,), PDTYPE), ln2_b=jnp.zeros((D,), PDTYPE),
            w1=_w(xavier_normal(nk(), (D, F))), b1=jnp.zeros((F,), PDTYPE),
            w2=_w(xavier_normal(nk(), (F, D))), b2=jnp.zeros((D,), PDTYPE),
            ln3_g=jnp.ones((D,), PDTYPE), ln3_b=jnp.zeros((D,), PDTYPE),
        )

    enc = dict(
        tok_emb=xavier_normal(nk(), (cfg["input_vocab_size"], E)),
        pos_emb=xavier_normal(nk(), (cfg["max_seq_len"], E)),
        in_proj_w=_w(xavier_normal(nk(), (E, D))), in_proj_b=jnp.zeros((D,), PDTYPE),
        layers=[enc_layer_params() for _ in range(cfg["num_encoder_layers"])],
    )
    dec = dict(
        tok_emb=xavier_normal(nk(), (cfg["output_vocab_size"], E)),
        pos_emb=xavier_normal(nk(), (cfg["max_output_tokens"], E)),
        in_proj_w=_w(xavier_normal(nk(), (E, D))), in_proj_b=jnp.zeros((D,), PDTYPE),
        layers=[dec_layer_params() for _ in range(cfg["num_decoder_layers"])],
        out_w=_w(xavier_normal(nk(), (D, cfg["output_vocab_size"]))),
        out_b=jnp.zeros((cfg["output_vocab_size"],), PDTYPE),
    )
    return dict(enc=enc, dec=dec)


# ---------------------------------- main -------------------------------------

if __name__ == "__main__":
    cfg = dict(
        input_vocab_size=32, output_vocab_size=40, embed_dim=32, d_model=32,
        num_encoder_layers=2, num_decoder_layers=2, num_attention_heads=2,
        ffwd_dim=64, max_seq_len=16, max_output_tokens=16,
    )
    key = jax.random.PRNGKey(0)
    pkey, ekey, dkey = jax.random.split(key, 3)

    params = init_params(pkey, cfg)

    B, Se, Sd = 2, 8, 8
    encoder_input = jax.random.randint(ekey, (B, Se), 0, cfg["input_vocab_size"],
                                       dtype=jnp.int32)
    decoder_input = jax.random.randint(dkey, (B, Sd), 0, cfg["output_vocab_size"],
                                       dtype=jnp.int32)

    out = differential_transformer_forward(
        params, encoder_input, decoder_input,
        num_heads=cfg["num_attention_heads"])
    jax.block_until_ready(out)

    assert out.shape == (B, Sd, cfg["output_vocab_size"]), out.shape
    assert jnp.all(jnp.isfinite(out.astype(jnp.float32)))
    print("KERNEL_OK")
</pallas_src>

<mosaic_0001>
module attributes {stable_mosaic.version = 11 : i64} {
  func.func @_linear_kernel(%arg0: i32, %arg1: memref<16x32xbf16, #tpu.memory_space<vmem>>, %arg2: memref<32x32xbf16, #tpu.memory_space<vmem>>, %arg3: memref<1x32xf32, #tpu.memory_space<vmem>>, %arg4: memref<16x32xbf16, #tpu.memory_space<vmem>>) attributes {dimension_semantics = [#tpu.dimension_semantics<parallel>], iteration_bounds = array<i64: 1>, scalar_prefetch = 0 : i64, scratch_operands = 0 : i64, tpu.core_type = #tpu.core_type<tc>, window_params = [{transform_indices = @transform_0, window_bounds = array<i64: 16, 32>}, {pipeline_mode = #tpu.pipeline_mode<synchronous>, transform_indices = @transform_1, window_bounds = array<i64: 32, 32>}, {pipeline_mode = #tpu.pipeline_mode<synchronous>, transform_indices = @transform_2, window_bounds = array<i64: 1, 32>}, {transform_indices = @transform_3, window_bounds = array<i64: 16, 32>}]} {
    %c0 = arith.constant 0 : index
    %c0_0 = arith.constant 0 : index
    %0 = vector.load %arg1[%c0, %c0_0] : memref<16x32xbf16, #tpu.memory_space<vmem>>, vector<16x32xbf16>
    %c0_1 = arith.constant 0 : index
    %c0_2 = arith.constant 0 : index
    %1 = vector.load %arg2[%c0_1, %c0_2] : memref<32x32xbf16, #tpu.memory_space<vmem>>, vector<32x32xbf16>
    %cst = arith.constant dense<0.000000e+00> : vector<16x32xf32>
    %2 = tpu.matmul %0, %1, %cst {dimension_numbers = #tpu.dot_dimension_numbers<[1], [0], [0], [1], [0, 0, 1, 1], [], []>} : vector<16x32xbf16>, vector<32x32xbf16>, vector<16x32xf32> -> vector<16x32xf32>
    %c0_3 = arith.constant 0 : index
    %c0_4 = arith.constant 0 : index
    %3 = vector.load %arg3[%c0_3, %c0_4] : memref<1x32xf32, #tpu.memory_space<vmem>>, vector<1x32xf32>
    %4 = vector.broadcast %3 : vector<1x32xf32> to vector<16x32xf32>
    %5 = arith.addf %2, %4 : vector<16x32xf32>
    %6 = arith.truncf %5 : vector<16x32xf32> to vector<16x32xbf16>
    %c0_5 = arith.constant 0 : index
    %c0_6 = arith.constant 0 : index
    %7 = vector.load %arg4[%c0_5, %c0_6] : memref<16x32xbf16, #tpu.memory_space<vmem>>, vector<16x32xbf16>
    tpu.vector_store %arg4[%c0_5, %c0_6], %6 {strides = array<i32>} : memref<16x32xbf16, #tpu.memory_space<vmem>>, vector<16x32xbf16>,
    return
  }
  func.func @transform_0(%arg0: i32) -> (i32, i32) {
    %c0_i32 = arith.constant 0 : i32
    %c0_i32_0 = arith.constant 0 : i32
    return %arg0, %c0_i32 : i32, i32
  }
  func.func @transform_1(%arg0: i32) -> (i32, i32) {
    %c0_i32 = arith.constant 0 : i32
    %c0_i32_0 = arith.constant 0 : i32
    %c0_i32_1 = arith.constant 0 : i32
    return %c0_i32, %c0_i32_0 : i32, i32
  }
  func.func @transform_2(%arg0: i32) -> (i32, i32) {
    %c0_i32 = arith.constant 0 : i32
    %c0_i32_0 = arith.constant 0 : i32
    %c0_i32_1 = arith.constant 0 : i32
    return %c0_i32, %c0_i32_0 : i32, i32
  }
  func.func @transform_3(%arg0: i32) -> (i32, i32) {
    %c0_i32 = arith.constant 0 : i32
    %c0_i32_0 = arith.constant 0 : i32
    return %arg0, %c0_i32 : i32, i32
  }
}

</mosaic_0001>

<bundles_post_ra>
// kernel: tpu_custom_call.1
= control target key start
LH: loop header
LB: loop body
LE: loop exit
PB: predicated region body
PF: predicated region fallthrough
CT: control target
= control target key end

     0   :  { %8 = vsyncpa [#allocation3], 0  ;;  %s325_s0 = inlined_call_operand.hbm [shape: bf16[16,32], index: 0, kind: input, shape index: {}]   ;;  %s326_s1 = inlined_call_operand.hbm [shape: bf16[32,32], index: 1, kind: input, shape index: {}]   ;;  %s327_s2 = inlined_call_operand.vmem [shape: f32[1,32], index: 2, kind: input, shape index: {}]   ;;  %s328_s3 = inlined_call_operand.hbm [shape: bf16[16,32], index: 3, kind: output, shape index: {}]  }
   0x1   :  { %9 = vsyncpa [#allocation6], 0 }
   0x2   :  { %10 = vsyncpa [#allocation4], 0  ;;  %s250_s12 = smov [#allocation2]   ;;  %s178_s16 = scalar_lea.hbm %s325_s0, 128 }
   0x3   :  { %s16_s13 = sshll.u32 %s250_s12, 4  ;;  %p179_p0 = scmp.ne.s32.totalorder %s325_s0, %s178_s16  ;;  %s17_s13 = int_to_ptr.vmem [resolvable:$true] %s16_s13 }
   0x4   :  { %p182_p1 = scmp.lt.u32.totalorder %s178_s16, %s325_s0 }
   0x6   :  { %p184_p2 = pnand %p182_p1, %p179_p0 }
   0x8   :  { %187 = shalt.err (!%p184_p2)
}
   0x9   :  { %s188_s21 = scalar_lea.vmem %s17_s13, 128  ;;  %p193_p4 = scmp.lt.s32.totalorder %s17_s13, %s17_s13 }
   0xa   :  { %p189_p3 = scmp.ne.s32.totalorder %s17_s13, %s188_s21  ;;  %p194_p5 = scmp.lt.s32.totalorder %s188_s21, %s188_s21 }
   0xc   :  { %p195_p6 = por %p194_p5, %p193_p4 }
   0xe   :  { %p196_p7 = pnand %p195_p6, %p189_p3 }
  0x10   :  { %199 = shalt.err (!%p196_p7)
}
  0x11   :  { %s251_s22 = smov 64   ;;  %s252_s23 = smov 4  }
  0x12   :  { %22 = dma.hbm_to_vmem [thread:$0]  %s325_s0, 128, %s17_s13, [#allocation3], %s251_s22, %s251_s22, %s252_s23  }
  0x13   :  { %s253_s26 = smov [#allocation5]   ;;  %s200_s30 = scalar_lea.hbm %s326_s1, 256 }
  0x14   :  { %s28_s27 = sshll.u32 %s253_s26, 4  ;;  %p201_p8 = scmp.ne.s32.totalorder %s326_s1, %s200_s30  ;;  %s29_s27 = int_to_ptr.vmem [resolvable:$true] %s28_s27 }
  0x15   :  { %p204_p9 = scmp.lt.u32.totalorder %s200_s30, %s326_s1 }
  0x17   :  { %p206_p10 = pnand %p204_p9, %p201_p8 }
  0x19   :  { %209 = shalt.err (!%p206_p10)
}
  0x1a   :  { %s210_s8 = scalar_lea.vmem %s29_s27, 256  ;;  %p215_p12 = scmp.lt.s32.totalorder %s29_s27, %s29_s27 }
  0x1b   :  { %p211_p11 = scmp.ne.s32.totalorder %s29_s27, %s210_s8  ;;  %p216_p13 = scmp.lt.s32.totalorder %s210_s8, %s210_s8 }
  0x1d   :  { %p217_p0 = por %p216_p13, %p215_p12 }
  0x1f   :  { %p218_p1 = pnand %p217_p0, %p211_p11 }
  0x21   :  { %221 = shalt.err (!%p218_p1)
}
  0x22   :  { %34 = dma.hbm_to_vmem [thread:$0]  %s326_s1, 256, %s29_s27, [#allocation6], %s251_s22, %s251_s22, %s252_s23  }
  0x23   :  { %244 = dma.done.wait [#allocation3], 128  }
  0x24   :  { %245 = vsyncadd [#allocation3], 4294967168 }
  0x25   :  { %246 = dma.done.wait [#allocation6], 256  }
  0x26   :  { %247 = vsyncadd [#allocation6], 4294967040  ;;  %v254_v0 = vmov 0.0   ;;  %vm255_vm0 = vmmov 0   ;;  %v175_v1 = vld [vmem:[#allocation5] sm:$0xff]   ;;  %v176_v2 = vld [vmem:[#allocation5 + $0x8] sm:$0xff]  }
  0x27   :  { %160 = vmatprep.subr.bf16.mxu0 %v254_v0  ;;  %164 = vmatprep.mubr.msk.bf16.mxu0 %vm255_vm0, %v254_v0  ;;  %v177_v3 = vld [vmem:[#allocation2] sm:$0xff]   ;;  %vm74_vm1 = vcmask 261120   ;;  %vm127_vm2 = vcmask 257024   ;;  %s256_s1 = smov [#allocation7]  }
  0x28   :  { %161 = vmatpush3.bf16.msra.mxu0 %v175_v1  ;;  %v148_v4 = vld [vmem:[%s327_s2] ss:$0 sm:$0xff]  ;;  %s135_s12 = sshll.u32 %s256_s1, 4  ;;  %s136_s12 = int_to_ptr.vmem [resolvable:$true] %s135_s12 }
  0x29   :  { %162 = vmatprep.subr.bf16.mxu0 %v254_v0  ;;  %s222_s13 = scalar_lea.vmem %s136_s12, 128  ;;  %p227_p3 = scmp.lt.s32.totalorder %s136_s12, %s136_s12 }
  0x2a   :  { %p223_p2 = scmp.ne.s32.totalorder %s136_s12, %s222_s13  ;;  %p228_p4 = scmp.lt.s32.totalorder %s222_s13, %s222_s13 }
  0x2c   :  { %163 = vmatpush3.bf16.msra.mxu0 %v176_v2  ;;  %p229_p5 = por %p228_p4, %p227_p3 }
  0x2e   :  { %p230_p6 = pnand %p229_p5, %p223_p2 }
  0x2f   :  { %165 = vmatmul.mubr.msk.bf16.vlgmr.msra.gmra.mrb[0].mxu0 %vm74_vm1, %v177_v3 }
 0x102   :  { %v112_v5 = vpop.f32.mrb[0].mxu0 }
 0x103   :  { %v113_v6 = vadd.f32 %v148_v4, %v112_v5  ;;  %v166_v7 = vpop.f32.mrb[1].mxu0 }
 0x104   :  { %v115_v8 = vpop.f32.mrb[2].mxu0 }
 0x105   :  { %v155_v9 = vpack.c.bf16 %v113_v6, %v113_v6  ;;  %v116_v10 = vadd.f32 %v148_v4, %v115_v8  ;;  %v167_v11 = vpop.f32.mrb[3].mxu0 }
 0x107   :  { %v156_v12 = vpack.c.bf16 %v116_v10, %v116_v10  ;;  %128 = vst.msk [vmem:[#allocation7] sm:$0xf] %vm127_vm2, %v155_v9 }
 0x109   :  { %129 = vst.msk [vmem:[#allocation7 + $0x4] sm:$0xf] %vm127_vm2, %v156_v12 }
 0x10a   :  { %233 = shalt.err (!%p230_p6)
}
 0x10b   :  { %s234_s15 = scalar_lea.hbm %s328_s3, 128 }
 0x10c   :  { %p235_p7 = scmp.ne.s32.totalorder %s328_s3, %s234_s15  ;;  %p238_p8 = scmp.lt.u32.totalorder %s234_s15, %s328_s3 }
 0x10e   :  { %p240_p9 = pnand %p238_p8, %p235_p7 }
 0x110   :  { %243 = shalt.err (!%p240_p9)
}
 0x111   :  { %141 = dma.vmem_to_hbm [thread:$0]  %s136_s12, 128, %s328_s3, [#allocation4], %s251_s22, %s251_s22, %s252_s23  }
 0x112   :  { %248 = dma.done.wait [#allocation4], 128  }
 0x113   :  { %249 = vsyncadd [#allocation4], 4294967168 }
 0x114   :  { %145 = vsyncpa [#allocation3], 1 }
 0x115   :  { %146 = vsyncpa [#allocation6], 1 }
 0x116   :  { %147 = vsyncpa [#allocation4], 1 }

</bundles_post_ra>
